<compile_context>
chip_gen: v7x
topology: tpu7x:2x2x1
jax: 0.10.0
libtpu: 0.0.40
codegen_flags: <defaults>
</compile_context>

<pallas_src>
import jax
import jax.numpy as jnp
from jax.experimental import pallas as pl
from jax.experimental.pallas import tpu as pltpu


def conv1x1_kernel(x_ref, w_ref, b_ref, o_ref):
    # x_ref: (B, C_in, S)   activations, lane-dense in S = H*W
    # w_ref: (C_out, C_in)  merged 1x1-conv weight
    # b_ref: (C_out, 1)     bias (broadcast over lanes)
    # o_ref: (B, C_out, S)
    w = w_ref[...]
    b = b_ref[...]
    # Static unroll over the (small) batch: the weight stays resident; each iteration
    # is one lane-dense (C_out, C_in) @ (C_in, S) MXU pass with fused bias + store.
    for i in range(x_ref.shape[0]):
        o_ref[i] = (jnp.dot(w, x_ref[i], preferred_element_type=jnp.float32)
                    + b).astype(o_ref.dtype)


def linear_forward(x, weight, bias):
    """1x1 Conv2d forward. x: (B, C_in, H, W); weight: (C_out, C_in, 1, 1); bias: (C_out,)."""
    B, C_in, H, W = x.shape
    C_out = weight.shape[0]
    S = H * W

    x_f = x.reshape(B, C_in, S)          # free reshape; lanes = H*W (lane-dense)
    w2d = weight.reshape(C_out, C_in)    # merged 1x1-conv weight
    b2d = bias.reshape(C_out, 1)

    out = pl.pallas_call(
        conv1x1_kernel,
        out_shape=jax.ShapeDtypeStruct((B, C_out, S), x.dtype),
        grid=(1,),
        in_specs=[
            pl.BlockSpec((B, C_in, S), lambda i: (0, 0, 0)),
            pl.BlockSpec((C_out, C_in), lambda i: (0, 0)),
            pl.BlockSpec((C_out, 1), lambda i: (0, 0)),
        ],
        out_specs=pl.BlockSpec((B, C_out, S), lambda i: (0, 0, 0)),
        compiler_params=pltpu.CompilerParams(
            # Single grid step; do not shard this tiny problem across TensorCores.
            dimension_semantics=("arbitrary",),
        ),
    )(x_f, w2d, b2d)

    return out.reshape(B, C_out, H, W)


def linear_reference(x, weight, bias):
    """Pure-JAX mirror of torch.nn.Conv2d(c_in, c_out, kernel_size=(1,1), bias=True)."""
    w2d = weight[:, :, 0, 0]
    return jnp.einsum('oi,bihw->bohw', w2d, x) + bias[None, :, None, None]


if __name__ == "__main__":
    # Small shapes consistent with the module: batch=2, c_in=4, 16x16 spatial, c_out=16.
    B, C_in, H, W = 2, 4, 16, 16
    C_out = 16

    key = jax.random.PRNGKey(0)
    kx, kw, kb = jax.random.split(key, 3)
    x = jax.random.normal(kx, (B, C_in, H, W), dtype=jnp.float32)
    weight = jax.random.normal(kw, (C_out, C_in, 1, 1), dtype=jnp.float32) * 0.2
    bias = jax.random.normal(kb, (C_out,), dtype=jnp.float32) * 0.1

    out = linear_forward(x, weight, bias)
    out = jax.block_until_ready(out)

    ref = linear_reference(x, weight, bias)
    assert out.shape == (B, C_out, H, W), out.shape
    assert jnp.allclose(out, ref, atol=1e-4, rtol=1e-4), "mismatch vs reference"

    print("KERNEL_OK")
</pallas_src>

<mosaic_0001>
module attributes {stable_mosaic.version = 11 : i64} {
  func.func @conv1x1_kernel(%arg0: i32, %arg1: memref<2x4x256xf32, #tpu.memory_space<vmem>>, %arg2: memref<16x4xf32, #tpu.memory_space<vmem>>, %arg3: memref<16x1xf32, #tpu.memory_space<vmem>>, %arg4: memref<2x16x256xf32, #tpu.memory_space<vmem>>) attributes {dimension_semantics = [#tpu.dimension_semantics<arbitrary>], iteration_bounds = array<i64: 1>, scalar_prefetch = 0 : i64, scratch_operands = 0 : i64, tpu.core_type = #tpu.core_type<tc>, window_params = [{pipeline_mode = #tpu.pipeline_mode<synchronous>, transform_indices = @transform_0, window_bounds = array<i64: 2, 4, 256>}, {pipeline_mode = #tpu.pipeline_mode<synchronous>, transform_indices = @transform_1, window_bounds = array<i64: 16, 4>}, {pipeline_mode = #tpu.pipeline_mode<synchronous>, transform_indices = @transform_2, window_bounds = array<i64: 16, 1>}, {pipeline_mode = #tpu.pipeline_mode<synchronous>, transform_indices = @transform_3, window_bounds = array<i64: 2, 16, 256>}]} {
    %c0 = arith.constant 0 : index
    %c0_0 = arith.constant 0 : index
    %0 = vector.load %arg2[%c0, %c0_0] : memref<16x4xf32, #tpu.memory_space<vmem>>, vector<16x4xf32>
    %c0_1 = arith.constant 0 : index
    %c0_2 = arith.constant 0 : index
    %1 = vector.load %arg3[%c0_1, %c0_2] : memref<16x1xf32, #tpu.memory_space<vmem>>, vector<16x1xf32>
    %c0_3 = arith.constant 0 : index
    %c0_4 = arith.constant 0 : index
    %c0_5 = arith.constant 0 : index
    %2 = vector.load %arg1[%c0_3, %c0_4, %c0_5] : memref<2x4x256xf32, #tpu.memory_space<vmem>>, vector<1x4x256xf32>
    %3 = vector.shape_cast %2 : vector<1x4x256xf32> to vector<4x256xf32>
    %cst = arith.constant dense<0.000000e+00> : vector<16x256xf32>
    %4 = tpu.matmul %0, %3, %cst {dimension_numbers = #tpu.dot_dimension_numbers<[1], [0], [0], [1], [0, 0, 1, 1], [], []>} : vector<16x4xf32>, vector<4x256xf32>, vector<16x256xf32> -> vector<16x256xf32>
    %5 = vector.broadcast %1 : vector<16x1xf32> to vector<16x256xf32>
    %6 = arith.addf %4, %5 : vector<16x256xf32>
    %c0_6 = arith.constant 0 : index
    %c0_7 = arith.constant 0 : index
    %c0_8 = arith.constant 0 : index
    %7 = vector.load %arg4[%c0_6, %c0_7, %c0_8] : memref<2x16x256xf32, #tpu.memory_space<vmem>>, vector<1x16x256xf32>
    %8 = vector.shape_cast %7 : vector<1x16x256xf32> to vector<16x256xf32>
    %9 = vector.shape_cast %6 : vector<16x256xf32> to vector<1x16x256xf32>
    tpu.vector_store %arg4[%c0_6, %c0_7, %c0_8], %9 {strides = array<i32>} : memref<2x16x256xf32, #tpu.memory_space<vmem>>, vector<1x16x256xf32>,
    %c1 = arith.constant 1 : index
    %c0_9 = arith.constant 0 : index
    %c0_10 = arith.constant 0 : index
    %10 = vector.load %arg1[%c1, %c0_9, %c0_10] : memref<2x4x256xf32, #tpu.memory_space<vmem>>, vector<1x4x256xf32>
    %11 = vector.shape_cast %10 : vector<1x4x256xf32> to vector<4x256xf32>
    %cst_11 = arith.constant dense<0.000000e+00> : vector<16x256xf32>
    %12 = tpu.matmul %0, %11, %cst_11 {dimension_numbers = #tpu.dot_dimension_numbers<[1], [0], [0], [1], [0, 0, 1, 1], [], []>} : vector<16x4xf32>, vector<4x256xf32>, vector<16x256xf32> -> vector<16x256xf32>
    %13 = vector.broadcast %1 : vector<16x1xf32> to vector<16x256xf32>
    %14 = arith.addf %12, %13 : vector<16x256xf32>
    %c1_12 = arith.constant 1 : index
    %c0_13 = arith.constant 0 : index
    %c0_14 = arith.constant 0 : index
    %15 = vector.load %arg4[%c1_12, %c0_13, %c0_14] : memref<2x16x256xf32, #tpu.memory_space<vmem>>, vector<1x16x256xf32>
    %16 = vector.shape_cast %15 : vector<1x16x256xf32> to vector<16x256xf32>
    %17 = vector.shape_cast %14 : vector<16x256xf32> to vector<1x16x256xf32>
    tpu.vector_store %arg4[%c1_12, %c0_13, %c0_14], %17 {strides = array<i32>} : memref<2x16x256xf32, #tpu.memory_space<vmem>>, vector<1x16x256xf32>,
    return
  }
  func.func @transform_0(%arg0: i32) -> (i32, i32, i32) {
    %c0_i32 = arith.constant 0 : i32
    %c0_i32_0 = arith.constant 0 : i32
    %c0_i32_1 = arith.constant 0 : i32
    %c0_i32_2 = arith.constant 0 : i32
    return %c0_i32, %c0_i32_0, %c0_i32_1 : i32, i32, i32
  }
  func.func @transform_1(%arg0: i32) -> (i32, i32) {
    %c0_i32 = arith.constant 0 : i32
    %c0_i32_0 = arith.constant 0 : i32
    %c0_i32_1 = arith.constant 0 : i32
    return %c0_i32, %c0_i32_0 : i32, i32
  }
  func.func @transform_2(%arg0: i32) -> (i32, i32) {
    %c0_i32 = arith.constant 0 : i32
    %c0_i32_0 = arith.constant 0 : i32
    %c0_i32_1 = arith.constant 0 : i32
    return %c0_i32, %c0_i32_0 : i32, i32
  }
  func.func @transform_3(%arg0: i32) -> (i32, i32, i32) {
    %c0_i32 = arith.constant 0 : i32
    %c0_i32_0 = arith.constant 0 : i32
    %c0_i32_1 = arith.constant 0 : i32
    %c0_i32_2 = arith.constant 0 : i32
    return %c0_i32, %c0_i32_0, %c0_i32_1 : i32, i32, i32
  }
}

</mosaic_0001>

<bundles_post_ra>
// kernel: tpu_custom_call.1
= control target key start
LH: loop header
LB: loop body
LE: loop exit
PB: predicated region body
PF: predicated region fallthrough
CT: control target
= control target key end

     0   :  { %vm39_vm0 = vcmask 1043456   ;;  %v272_v4 = vmov 0.0   ;;  %vm32_vm1 = vcmask 31744   ;;  %v273_v6 = vmov 0   ;;  %s331_s0 = inlined_call_operand.vmem [shape: f32[2,4,256], index: 0, kind: input, shape index: {}]   ;;  %s332_s1 = inlined_call_operand.vmem [shape: f32[16,4], index: 1, kind: input, shape index: {}]   ;;  %s333_s2 = inlined_call_operand.vmem [shape: f32[16,1], index: 2, kind: input, shape index: {}]   ;;  %s334_s3 = inlined_call_operand.hbm [shape: f32[2,16,256], index: 3, kind: output, shape index: {}]  }
   0x1   :  { %v19_v0 = vld [vmem:[%s331_s0] sm:$0xff]  ;;  %v235_v1 = vld [vmem:[%s331_s0 + $0x8] sm:$0xff]  ;;  %108 = vmatprep.mubr.f32.mxu0 %v272_v4  ;;  %197 = vmatprep.mubr.f32.mxu1 %v272_v4 }
   0x2   :  { %v31_v2 = vcombine.high %v19_v0, %v19_v0  ;;  %v128_v3 = vcombine.high %v235_v1, %v235_v1  ;;  %v15_v5 = vld [vmem:[%s332_s1] sm:$0xff]  ;;  %245 = vset.pattern.permute.xlu0 %v273_v6 }
   0x3   :  { %8 = vsyncpa [#allocation3], 0  ;;  %v17_v7 = vld [vmem:[%s333_s2] sm:$0xff]  ;;  %v16_v8 = vld [vmem:[%s332_s1 + $0x8] sm:$0xff]  ;;  %s274_s1 = smov [#allocation2]  }
   0x4   :  { %231 = vmatprep.subr.msk.mxu0 %vm39_vm0, %v31_v2  ;;  %236 = vmatprep.subr.msk.mxu1 %vm39_vm0, %v128_v3  ;;  %v18_v9 = vld [vmem:[%s333_s2 + $0x8] sm:$0xff]  ;;  %s220_s23 = sshll.u32 %s274_s1, 4  ;;  %s221_s23 = int_to_ptr.vmem [resolvable:$true] %s220_s23 }
   0x5   :  { %232 = vmatpush1.msk.msra.mxu0 %vm39_vm0, %v19_v0  ;;  %237 = vmatpush1.msk.msra.mxu1 %vm39_vm0, %v235_v1  ;;  %s248_s2 = scalar_lea.vmem %s221_s23, 1024  ;;  %p253_p1 = scmp.lt.s32.totalorder %s221_s23, %s221_s23 }
   0x6   :  { %233 = vmatmul.mubr.msk.f32.vlgmr.msra.gmra.mrb[0].mxu0 %vm32_vm1, %v15_v5  ;;  %238 = vmatmul.mubr.msk.f32.vlgmr.msra.gmra.mrb[0].mxu1 %vm32_vm1, %v15_v5  ;;  %p249_p0 = scmp.ne.s32.totalorder %s221_s23, %s248_s2  ;;  %p254_p2 = scmp.lt.s32.totalorder %s248_s2, %s248_s2 }
   0x7   :  { %114 = vmatprep.mubr.f32.mxu0 %v272_v4  ;;  %203 = vmatprep.mubr.f32.mxu1 %v272_v4 }
   0x8   :  { %22 = vperm.xlu0 %245, %v17_v7   ;;  %p255_p3 = por %p254_p2, %p253_p1 }
   0xa   :  { %234 = vmatmul.mubr.msk.f32.gmra.mrb[2].mxu0 %vm32_vm1, %v16_v8  ;;  %239 = vmatmul.mubr.msk.f32.gmra.mrb[2].mxu1 %vm32_vm1, %v16_v8  ;;  %p256_p4 = pnand %p255_p3, %p249_p0 }
   0xc   :  { %27 = vperm.xlu0 %245, %v18_v9  }
  0x87   :  { %v23_v10 = vpop.permute.xlu0 %22 }
  0x8b   :  { %v28_v19 = vpop.permute.xlu0 %27 }
  0xd9   :  { %v110_v11 = vpop.f32.mrb[0].mxu0  ;;  %v199_v12 = vpop.f32.mrb[0].mxu1 }
  0xda   :  { %v111_v13 = vadd.f32 %v110_v11, %v23_v10  ;;  %v200_v14 = vadd.f32 %v199_v12, %v23_v10  ;;  %v112_v15 = vpop.f32.mrb[1].mxu0  ;;  %v201_v16 = vpop.f32.mrb[1].mxu1 }
  0xdb   :  { %v113_v17 = vadd.f32 %v112_v15, %v23_v10  ;;  %v202_v18 = vadd.f32 %v201_v16, %v23_v10 }
  0xdc   :  { %121 = vst [vmem:[#allocation2] sm:$0xff] %v111_v13  ;;  %211 = vst [vmem:[#allocation2 + $0x20] sm:$0xff] %v200_v14 }
  0xdd   :  { %122 = vst [vmem:[#allocation2 + $0x8] sm:$0xff] %v113_v17  ;;  %212 = vst [vmem:[#allocation2 + $0x28] sm:$0xff] %v202_v18  ;;  %v116_v20 = vpop.f32.mrb[2].mxu0  ;;  %v205_v21 = vpop.f32.mrb[2].mxu1 }
  0xde   :  { %v117_v22 = vadd.f32 %v116_v20, %v28_v19  ;;  %v206_v23 = vadd.f32 %v205_v21, %v28_v19  ;;  %v118_v24 = vpop.f32.mrb[3].mxu0  ;;  %v207_v25 = vpop.f32.mrb[3].mxu1 }
  0xdf   :  { %v119_v26 = vadd.f32 %v118_v24, %v28_v19  ;;  %v208_v27 = vadd.f32 %v207_v25, %v28_v19 }
  0xe0   :  { %123 = vst [vmem:[#allocation2 + $0x10] sm:$0xff] %v117_v22  ;;  %213 = vst [vmem:[#allocation2 + $0x30] sm:$0xff] %v206_v23 }
  0xe1   :  { %124 = vst [vmem:[#allocation2 + $0x18] sm:$0xff] %v119_v26  ;;  %214 = vst [vmem:[#allocation2 + $0x38] sm:$0xff] %v208_v27 }
  0xe2   :  { %259 = shalt.err (!%p256_p4)
}
  0xe3   :  { %s260_s26 = scalar_lea.hbm %s334_s3, 1024 }
  0xe4   :  { %p261_p5 = scmp.ne.s32.totalorder %s334_s3, %s260_s26  ;;  %p264_p6 = scmp.lt.u32.totalorder %s260_s26, %s334_s3 }
  0xe6   :  { %p266_p7 = pnand %p264_p6, %p261_p5 }
  0xe8   :  { %269 = shalt.err (!%p266_p7)
}
  0xe9   :  { %s275_s4 = smov 256   ;;  %s276_s5 = smov 16  }
  0xea   :  { %226 = dma.vmem_to_hbm [thread:$0]  %s221_s23, 1024, %s334_s3, [#allocation3], %s275_s4, %s275_s4, %s276_s5  }
  0xeb   :  { %270 = dma.done.wait [#allocation3], 1024  }
  0xec   :  { %271 = vsyncadd [#allocation3], 4294966272 }
  0xed   :  { %230 = vsyncpa [#allocation3], 1 }

</bundles_post_ra>
